<compile_context>
chip_gen: v7x
topology: tpu7x:2x2x1
jax: 0.10.0
libtpu: 0.0.40
codegen_flags: <defaults>
</compile_context>

<pallas_src>
import jax
import jax.numpy as jnp
from jax.experimental import pallas as pl
from jax.experimental.pallas import tpu as pltpu

TOKEN_TILE = 112  # token rows per grid tile (multiple of 16 -> bf16 sublane-aligned)


# ---------------------------------------------------------------------------
# Pallas kernel
# ---------------------------------------------------------------------------
def spt_kernel(x_ref, w_ref, pos_ref, o_ref):
    """One (batch, token-tile) block of the patch embedding.

    x_ref  : (1, TM, K) bf16  flattened patches
    w_ref  : (K, E)     bf16  conv weight, (C*p*p, E), VMEM-resident across tiles
    pos_ref: (TM, E)    f32   position embedding with conv bias folded in
    o_ref  : (1, TM, E) bf16  output tokens
    """
    y = jnp.dot(x_ref[0], w_ref[...], preferred_element_type=jnp.float32)  # MXU, f32 acc
    o_ref[0] = (y + pos_ref[...]).astype(o_ref.dtype)                      # f32 epilogue


# ---------------------------------------------------------------------------
# Wrappers
# ---------------------------------------------------------------------------
def extract_patches(x, patch_size):
    """NCHW image -> (B, num_patches, C*patch*patch); patch flattened in (C, kh, kw)
    order to match a Conv2d(kernel=stride=patch) weight flattening."""
    B, C, H, W = x.shape
    ph, pw = H // patch_size, W // patch_size
    x = x.reshape(B, C, ph, patch_size, pw, patch_size)
    x = x.transpose(0, 2, 4, 1, 3, 5)            # B, ph, pw, C, p, p
    return x.reshape(B, ph * pw, C * patch_size * patch_size)


def prepare_spt_params(conv_w, conv_b, pos_emb, token_tile=TOKEN_TILE):
    """One-time parameter prep (hoisted out of the forward pass)."""
    E, C, ph, pw = conv_w.shape
    K = C * ph * pw
    P = pos_emb.shape[1]
    P_pad = ((P + token_tile - 1) // token_tile) * token_tile
    wt = conv_w.reshape(E, K).T.astype(jnp.bfloat16)                       # (K, E)
    # Fold the conv bias into the position embedding; zero-pad the extra rows so
    # padded tokens come out exactly zero.
    pos = pos_emb[0].astype(jnp.float32) + conv_b[None, :].astype(jnp.float32)
    pos_pad = jnp.zeros((P_pad, E), jnp.float32).at[:P, :].set(pos)        # (P_pad, E)
    return wt, pos_pad


def spt_forward(x, wt, pos_pad, patch_size, token_tile=TOKEN_TILE):
    B, C, H, W = x.shape
    K, E = wt.shape
    P = (H // patch_size) * (W // patch_size)
    P_pad = pos_pad.shape[0]
    assert K == C * patch_size * patch_size, (K, C, patch_size)
    assert pos_pad.shape[1] == E
    assert token_tile % 16 == 0 and P_pad % token_tile == 0
    # SPT sizes its position embedding for 224x224 inputs; the input P must match.
    assert P_pad - token_tile < P <= P_pad, (
        "SPT position embedding is sized for 224x224 inputs; got a mismatched P")

    # Patch extraction in bf16 (halves the transpose traffic; bf16 feeds the MXU),
    # padded to a sublane-aligned token count.  Under jit the cast/transpose/pad
    # fuse into one XLA pass.
    x_p = extract_patches(x.astype(jnp.bfloat16), patch_size)             # (B, P, K)
    x_p = jnp.pad(x_p, ((0, 0), (0, P_pad - P), (0, 0)))                  # (B, P_pad, K)

    out = pl.pallas_call(
        spt_kernel,
        out_shape=jax.ShapeDtypeStruct((B, P_pad, E), jnp.bfloat16),
        grid_spec=pltpu.PrefetchScalarGridSpec(
            num_scalar_prefetch=0,
            grid=(B, P_pad // token_tile),          # all-parallel: >=2 tiles even at B==1
            in_specs=[
                pl.BlockSpec((1, token_tile, K), lambda b, t: (b, t, 0)),
                pl.BlockSpec((K, E), lambda b, t: (0, 0)),            # VMEM-resident
                pl.BlockSpec((token_tile, E), lambda b, t: (t, 0)),
            ],
            out_specs=pl.BlockSpec((1, token_tile, E), lambda b, t: (b, t, 0)),
        ),
        compiler_params=pltpu.CompilerParams(
            dimension_semantics=("parallel", "parallel")),
    )(x_p, wt, pos_pad)

    # Drop the padded token rows: (B, P_pad, E) -> (B, P, E), bf16.
    return out[:, :P, :]


def head_forward(tokens, head_w, head_b):
    # TODO(synk): the real BaseModel feeds tokens into an arbitrary timm backbone;
    # that is not translatable, so a mean-pool + linear classifier stands in.
    # It is a few KFLOP, so it runs in plain XLA rather than a second pallas_call.
    pooled = jnp.mean(tokens.astype(jnp.float32), axis=1)                  # (B, E)
    return pooled @ head_w + head_b[None, :]                               # (B, num_classes)


def base_model_forward(x, params, patch_size):
    tokens = spt_forward(x, params["wt"], params["pos_pad"], patch_size)
    return head_forward(tokens, params["head_w"], params["head_b"])


# ---------------------------------------------------------------------------
# Deterministic parameter init (shapes follow the module __init__)
# ---------------------------------------------------------------------------
def init_params(key, in_chans, patch_size, embed_dim, num_classes):
    k1, k2, k3, k4, k5 = jax.random.split(key, 5)
    num_patches = (224 // patch_size) ** 2
    fan_in = in_chans * patch_size * patch_size
    conv_w = jax.random.normal(k1, (embed_dim, in_chans, patch_size, patch_size),
                               jnp.float32) * (1.0 / fan_in) ** 0.5
    conv_b = jax.random.normal(k2, (embed_dim,), jnp.float32) * 0.01
    pos_emb = jax.random.normal(k3, (1, num_patches, embed_dim), jnp.float32)
    head_w = jax.random.normal(k4, (embed_dim, num_classes),
                               jnp.float32) * (1.0 / embed_dim) ** 0.5
    head_b = jax.random.normal(k5, (num_classes,), jnp.float32) * 0.01
    return dict(conv_w=conv_w, conv_b=conv_b, pos_emb=pos_emb,
                head_w=head_w, head_b=head_b)


if __name__ == "__main__":
    # SPT hard-codes num_patches from a 224x224 input with patch_size=16, so the
    # spatial size must be 224 for the position-embedding add to be valid.
    B, C, HW = 2, 4, 224
    PATCH = 16
    EMBED = 64
    NUM_CLASSES = 10

    key = jax.random.PRNGKey(0)
    kx, kp = jax.random.split(key)
    x = jax.random.normal(kx, (B, C, HW, HW), jnp.float32)
    raw = init_params(kp, C, PATCH, EMBED, NUM_CLASSES)

    # One-time parameter prep (weight transpose/cast, bias fold, padding).
    wt, pos_pad = prepare_spt_params(raw["conv_w"], raw["conv_b"], raw["pos_emb"])
    params = dict(wt=wt, pos_pad=pos_pad, head_w=raw["head_w"], head_b=raw["head_b"])

    fwd = jax.jit(base_model_forward, static_argnames=("patch_size",))
    out = jax.block_until_ready(fwd(x, params, patch_size=PATCH))
    assert out.shape == (B, NUM_CLASSES), out.shape

    # Reference check of the SPT part against an f32 reference built from the SAME
    # bf16-cast inputs the kernel consumes, so the tolerance only has to cover the
    # final bf16 rounding of the output (plus f32 accumulation-order noise).
    tokens = jax.block_until_ready(
        spt_forward(x, params["wt"], params["pos_pad"], PATCH))
    x_p32 = extract_patches(x.astype(jnp.bfloat16), PATCH).astype(jnp.float32)
    ref = (x_p32 @ params["wt"].astype(jnp.float32)
           + raw["conv_b"][None, None, :] + raw["pos_emb"])
    assert tokens.shape == ref.shape, (tokens.shape, ref.shape)
    err = float(jnp.max(jnp.abs(tokens.astype(jnp.float32) - ref)))
    assert err < 4e-2, err

    print("KERNEL_OK")
</pallas_src>

<mosaic_0001>
module attributes {stable_mosaic.version = 11 : i64} {
  func.func @spt_kernel(%arg0: i32, %arg1: i32, %arg2: memref<1x112x1024xbf16, #tpu.memory_space<vmem>>, %arg3: memref<1024x64xbf16, #tpu.memory_space<vmem>>, %arg4: memref<112x64xf32, #tpu.memory_space<vmem>>, %arg5: memref<1x112x64xbf16, #tpu.memory_space<vmem>>) attributes {dimension_semantics = [#tpu.dimension_semantics<parallel>, #tpu.dimension_semantics<parallel>], iteration_bounds = array<i64: 2, 2>, scalar_prefetch = 0 : i64, scratch_operands = 0 : i64, tpu.core_type = #tpu.core_type<tc>, window_params = [{transform_indices = @transform_0, window_bounds = array<i64: 1, 112, 1024>}, {pipeline_mode = #tpu.pipeline_mode<synchronous>, transform_indices = @transform_1, window_bounds = array<i64: 1024, 64>}, {transform_indices = @transform_2, window_bounds = array<i64: 112, 64>}, {transform_indices = @transform_3, window_bounds = array<i64: 1, 112, 64>}]} {
    %c0 = arith.constant 0 : index
    %c0_0 = arith.constant 0 : index
    %c0_1 = arith.constant 0 : index
    %0 = vector.load %arg2[%c0, %c0_0, %c0_1] : memref<1x112x1024xbf16, #tpu.memory_space<vmem>>, vector<1x112x1024xbf16>
    %1 = vector.shape_cast %0 : vector<1x112x1024xbf16> to vector<112x1024xbf16>
    %c0_2 = arith.constant 0 : index
    %c0_3 = arith.constant 0 : index
    %2 = vector.load %arg3[%c0_2, %c0_3] : memref<1024x64xbf16, #tpu.memory_space<vmem>>, vector<1024x64xbf16>
    %cst = arith.constant dense<0.000000e+00> : vector<112x64xf32>
    %3 = tpu.matmul %1, %2, %cst {dimension_numbers = #tpu.dot_dimension_numbers<[1], [0], [0], [1], [0, 0, 1, 1], [], []>} : vector<112x1024xbf16>, vector<1024x64xbf16>, vector<112x64xf32> -> vector<112x64xf32>
    %c0_4 = arith.constant 0 : index
    %c0_5 = arith.constant 0 : index
    %4 = vector.load %arg4[%c0_4, %c0_5] : memref<112x64xf32, #tpu.memory_space<vmem>>, vector<112x64xf32>
    %5 = arith.addf %3, %4 : vector<112x64xf32>
    %6 = arith.truncf %5 : vector<112x64xf32> to vector<112x64xbf16>
    %c0_6 = arith.constant 0 : index
    %c0_7 = arith.constant 0 : index
    %c0_8 = arith.constant 0 : index
    %7 = vector.load %arg5[%c0_6, %c0_7, %c0_8] : memref<1x112x64xbf16, #tpu.memory_space<vmem>>, vector<1x112x64xbf16>
    %8 = vector.shape_cast %7 : vector<1x112x64xbf16> to vector<112x64xbf16>
    %9 = vector.shape_cast %6 : vector<112x64xbf16> to vector<1x112x64xbf16>
    tpu.vector_store %arg5[%c0_6, %c0_7, %c0_8], %9 {strides = array<i32>} : memref<1x112x64xbf16, #tpu.memory_space<vmem>>, vector<1x112x64xbf16>,
    return
  }
  func.func @transform_0(%arg0: i32, %arg1: i32) -> (i32, i32, i32) {
    %c0_i32 = arith.constant 0 : i32
    %c0_i32_0 = arith.constant 0 : i32
    return %arg0, %arg1, %c0_i32 : i32, i32, i32
  }
  func.func @transform_1(%arg0: i32, %arg1: i32) -> (i32, i32) {
    %c0_i32 = arith.constant 0 : i32
    %c0_i32_0 = arith.constant 0 : i32
    %c0_i32_1 = arith.constant 0 : i32
    return %c0_i32, %c0_i32_0 : i32, i32
  }
  func.func @transform_2(%arg0: i32, %arg1: i32) -> (i32, i32) {
    %c0_i32 = arith.constant 0 : i32
    %c0_i32_0 = arith.constant 0 : i32
    return %arg1, %c0_i32 : i32, i32
  }
  func.func @transform_3(%arg0: i32, %arg1: i32) -> (i32, i32, i32) {
    %c0_i32 = arith.constant 0 : i32
    %c0_i32_0 = arith.constant 0 : i32
    return %arg0, %arg1, %c0_i32 : i32, i32, i32
  }
}

</mosaic_0001>

<bundles_post_ra>
// kernel: base_model_forward.1
= control target key start
LH: loop header
LB: loop body
LE: loop exit
PB: predicated region body
PF: predicated region fallthrough
CT: control target
= control target key end

     0   :  { %s2187_s12 = smov 0   ;;  %s2189_s13 = smov 0   ;;  %s2598_s0 = inlined_call_operand.vmem [shape: bf16[2,224,1024], index: 0, kind: input, shape index: {}]   ;;  %s2599_s1 = inlined_call_operand.vmem [shape: bf16[1024,64], index: 1, kind: input, shape index: {}]   ;;  %s2600_s2 = inlined_call_operand.vmem [shape: f32[224,64], index: 2, kind: input, shape index: {}]   ;;  %s2601_s3 = inlined_call_operand.vmem [shape: bf16[2,224,64], index: 3, kind: output, shape index: {}]  }
   0x1   :  { %s2191_s14 = smov 0   ;;  %s2193_s15 = smov 0  }
   0x2   :  { %s2195_s16 = smov 0  }
   0x3 LB: > { %s22_s17 = sadd.s32 1, %s2157_s14  ;;  %s25_s18 = sadd.s32 1, %s2161_s15  ;;  %s2165_s16 = sphi %s2195_s16, %s13_s16   ;;  %s2161_s15 = sphi %s2193_s15, %s2605_s15   ;;  %s2157_s14 = sphi %s2191_s14, %s2604_s14   ;;  %s2153_s13 = sphi %s2189_s13, %s2603_s13   ;;  %s2149_s12 = sphi %s2187_s12, %s2602_s12  }
   0x4   : > { %p23_p0 = scmp.ge.s32.totalorder %s22_s17, 2  ;;  %p1634_p1 = scmp.ge.s32.totalorder %s2165_s16, 1 }
   0x5   : > { %p170_p2 = scmp.lt.s32.totalorder %s2165_s16, 5 }
   0x6   : > { %s2607_s17 = smov (%p23_p0, %s22_s17), 0  ;;  %s2609_s18 = smov (!%p23_p0, %s25_s18), %s2161_s15 }
   0x7   : > { %p171_p3 = pnand %p1634_p1, %p170_p2  ;;  %p27_p4 = scmp.ge.s32.totalorder %s2609_s18, 2 }
   0x8   : > { %v2063_v0 = vld [vmem:[%s2599_s1 + $0x40] sm:$0xff] (!%p171_p3)   ;;  %v2067_v4 = vld [vmem:[%s2599_s1 + $0x48] sm:$0xff] (!%p171_p3)   ;;  %v2071_v8 = vld [vmem:[%s2599_s1 + $0x50] sm:$0xff] (!%p171_p3)   ;;  %s208_s10 = smul.u32 (!%p171_p3), 14, %s2149_s12  ;;  %p209_p5 = scmp.lt.s32.totalorder (!%p171_p3), %s2153_s13, 1  ;;  %vm1510_vm0 = vcmask (!%p171_p3), 519168  }
   0x9   : > { %s2611_s18 = smov (%p27_p4, %s2609_s18), 0  ;;  %174 = sbr.rel (%p171_p3) target bundleno = 371 (0x173), region = 32 }
   0xa   : > { %v2064_v1 = vld [vmem:[%s2599_s1 + $0xc0] sm:$0xff] (!%p171_p3)   ;;  %1789 = vmatprep.subr.bf16.mxu0 (!%p171_p3), %v2063_v0  ;;  %v2068_v5 = vld [vmem:[%s2599_s1 + $0xc8] sm:$0xff] (!%p171_p3)   ;;  %v2072_v9 = vld [vmem:[%s2599_s1 + $0xd0] sm:$0xff] (!%p171_p3)   ;;  %p211_p6 = scmp.lt.s32.totalorder (!%p171_p3), %s208_s10, 27 }
   0xb   : > { %v2065_v2 = vld [vmem:[%s2599_s1] sm:$0xff] (!%p171_p3)   ;;  %1847 = vmatprep.subr.bf16.mxu1 (!%p171_p3), %v2064_v1  ;;  %v2069_v6 = vld [vmem:[%s2599_s1 + $0x8] sm:$0xff] (!%p171_p3)   ;;  %v2073_v10 = vld [vmem:[%s2599_s1 + $0x10] sm:$0xff] (!%p171_p3)  }
   0xc   : > { %v2066_v3 = vld [vmem:[%s2599_s1 + $0x80] sm:$0xff] (!%p171_p3)   ;;  %1790 = vmatpush3.bf16.msra.mxu0 (!%p171_p3), %v2065_v2  ;;  %v2070_v7 = vld [vmem:[%s2599_s1 + $0x88] sm:$0xff] (!%p171_p3)   ;;  %v2074_v11 = vld [vmem:[%s2599_s1 + $0x90] sm:$0xff] (!%p171_p3)  }
   0xd   : > { %1848 = vmatpush3.bf16.msra.mxu1 (!%p171_p3), %v2066_v3  ;;  %1791 = vmatprep.subr.bf16.mxu0 (!%p171_p3), %v2067_v4  ;;  %v2075_v12 = vld [vmem:[%s2599_s1 + $0x58] sm:$0xff] (!%p171_p3)   ;;  %v2079_v16 = vld [vmem:[%s2599_s1 + $0x60] sm:$0xff] (!%p171_p3)   ;;  %v2083_v20 = vld [vmem:[%s2599_s1 + $0x68] sm:$0xff] (!%p171_p3)  }
   0xe   : > { %1849 = vmatprep.subr.bf16.mxu1 (!%p171_p3), %v2068_v5  ;;  %v2076_v13 = vld [vmem:[%s2599_s1 + $0xd8] sm:$0xff] (!%p171_p3)   ;;  %v2080_v17 = vld [vmem:[%s2599_s1 + $0xe0] sm:$0xff] (!%p171_p3)   ;;  %v2084_v21 = vld [vmem:[%s2599_s1 + $0xe8] sm:$0xff] (!%p171_p3)  }
   0xf   : > { %v2077_v14 = vld [vmem:[%s2599_s1 + $0x18] sm:$0xff] (!%p171_p3)   ;;  %v2081_v18 = vld [vmem:[%s2599_s1 + $0x20] sm:$0xff] (!%p171_p3)   ;;  %v2085_v22 = vld [vmem:[%s2599_s1 + $0x28] sm:$0xff] (!%p171_p3)  }
  0x10   : > { %1792 = vmatpush3.bf16.msra.mxu0 %v2069_v6  ;;  %v2078_v15 = vld [vmem:[%s2599_s1 + $0x98] sm:$0xff]   ;;  %s2613_s13 = smov (!%p209_p5, %s2153_s13), 1  ;;  %s2615_s10 = smov (!%p211_p6, %s208_s10), 27  ;;  %v2082_v19 = vld [vmem:[%s2599_s1 + $0xa0] sm:$0xff]   ;;  %v2086_v23 = vld [vmem:[%s2599_s1 + $0xa8] sm:$0xff]  }
  0x11   : > { %1850 = vmatpush3.bf16.msra.mxu1 %v2070_v7  ;;  %1793 = vmatprep.subr.bf16.mxu0 %v2071_v8  ;;  %s2021_s20 = smul.u32 224, %s2613_s13  ;;  %s1635_s23 = sshll.u32 %s2615_s10, 3  ;;  %v2087_v24 = vld [vmem:[%s2599_s1 + $0x70] sm:$0xff]   ;;  %v2091_v28 = vld [vmem:[%s2599_s1 + $0x78] sm:$0xff]   ;;  %v2095_v40 = vld [vmem:[%s2599_s1 + $0x140] sm:$0xff]  }
  0x12   : > { %1851 = vmatprep.subr.bf16.mxu1 %v2072_v9  ;;  %v2088_v25 = vld [vmem:[%s2599_s1 + $0xf0] sm:$0xff]   ;;  %v2092_v29 = vld [vmem:[%s2599_s1 + $0xf8] sm:$0xff]   ;;  %v2096_v41 = vld [vmem:[%s2599_s1 + $0x100] sm:$0xff]   ;;  %s2490_s12 = scalar_lea.vmem %s2600_s2, %s1635_s23 }
  0x13   : > { %s215_s29 = sadd.s32 %s2021_s20, %s1635_s23  ;;  %v2089_v26 = vld [vmem:[%s2599_s1 + $0x30] sm:$0xff]   ;;  %v2093_v30 = vld [vmem:[%s2599_s1 + $0x38] sm:$0xff]   ;;  %v2097_v42 = vld [vmem:[%s2599_s1 + $0x1c0] sm:$0xff]   ;;  %s2022_s23 = smul.u32 28, %s2613_s13 }
  0x14   : > { %1794 = vmatpush3.bf16.msra.mxu0 %v2073_v10  ;;  %s1636_s9 = sshll.u32 %s215_s29, 2  ;;  %v2090_v27 = vld [vmem:[%s2599_s1 + $0xb0] sm:$0xff]   ;;  %v2094_v31 = vld [vmem:[%s2599_s1 + $0xb8] sm:$0xff]   ;;  %v2098_v43 = vld [vmem:[%s2599_s1 + $0x180] sm:$0xff]  }
  0x15   : > { %1852 = vmatpush3.bf16.msra.mxu1 %v2074_v11  ;;  %1795 = vmatprep.subr.bf16.mxu0 %v2075_v12  ;;  %s2325_s26 = scalar_lea.vmem %s2598_s0, %s1636_s9  ;;  %v2099_v50 = vld [vmem:[%s2599_s1 + $0x148] sm:$0xff]   ;;  %v2103_v56 = vld [vmem:[%s2599_s1 + $0x150] sm:$0xff]   ;;  %v2107_v3 = vld [vmem:[%s2599_s1 + $0x158] sm:$0xff]  }
  0x16   : > { %1853 = vmatprep.subr.bf16.mxu1 %v2076_v13  ;;  %v236_v32 = vld [vmem:[%s2325_s26] sm:$0xff]  ;;  %v237_v34 = vld [vmem:[%s2325_s26 + $0x8] sm:$0xff]  ;;  %v2104_v63 = vld [vmem:[%s2599_s1 + $0x110] sm:$0xff]  }
  0x17   : > { %v240_v33 = vld [vmem:[%s2325_s26 + $0x20] sm:$0xff]  ;;  %v241_v37 = vld [vmem:[%s2325_s26 + $0x28] sm:$0xff]  ;;  %v2105_v0 = vld [vmem:[%s2599_s1 + $0x1d0] sm:$0xff]  }
  0x18   : > { %1796 = vmatpush3.bf16.msra.mxu0 %v2077_v14  ;;  %v1639_v35 = vcombine.low %v236_v32, %v240_v33  ;;  %v1640_v36 = vcombine.high %v236_v32, %v240_v33  ;;  %v1641_v38 = vcombine.low %v237_v34, %v241_v37  ;;  %v1642_v39 = vcombine.high %v237_v34, %v241_v37  ;;  %v244_v44 = vld [vmem:[%s2325_s26 + $0x40] sm:$0xff]  ;;  %v245_v47 = vld [vmem:[%s2325_s26 + $0x48] sm:$0xff]  ;;  %v2106_v1 = vld [vmem:[%s2599_s1 + $0x190] sm:$0xff]  }
  0x19   : > { %1854 = vmatpush3.bf16.msra.mxu1 %v2078_v15  ;;  %1797 = vmatprep.subr.bf16.mxu0 %v2079_v16  ;;  %v248_v45 = vld [vmem:[%s2325_s26 + $0x60] sm:$0xff]  ;;  %v249_v48 = vld [vmem:[%s2325_s26 + $0x68] sm:$0xff]  ;;  %v2108_v5 = vld [vmem:[%s2599_s1 + $0x118] sm:$0xff]  }
  0x1a   : > { %1855 = vmatprep.subr.bf16.mxu1 %v2080_v17  ;;  %1130 = vmatprep.mubr.bf16.mxu0 %v1640_v36  ;;  %v1648_v46 = vcombine.high %v244_v44, %v248_v45  ;;  %v1650_v49 = vcombine.high %v245_v47, %v249_v48  ;;  %v1647_v51 = vcombine.low %v244_v44, %v248_v45  ;;  %v2100_v52 = vld [vmem:[%s2599_s1 + $0x108] sm:$0xff]   ;;  %v252_v57 = vld [vmem:[%s2325_s26 + $0x80] sm:$0xff]  ;;  %v2109_v12 = vld [vmem:[%s2599_s1 + $0x1d8] sm:$0xff]  }
  0x1b   : > { %1219 = vmatprep.mubr.bf16.mxu1 %v1642_v39  ;;  %v1649_v53 = vcombine.low %v245_v47, %v249_v48  ;;  %v2101_v54 = vld [vmem:[%s2599_s1 + $0x1c8] sm:$0xff]   ;;  %v256_v58 = vld [vmem:[%s2325_s26 + $0xa0] sm:$0xff]  ;;  %v2110_v13 = vld [vmem:[%s2599_s1 + $0x198] sm:$0xff]  }
  0x1c   : > { %1798 = vmatpush3.bf16.msra.mxu0 %v2081_v18  ;;  %v2102_v55 = vld [vmem:[%s2599_s1 + $0x188] sm:$0xff]   ;;  %v1656_v61 = vcombine.high %v252_v57, %v256_v58  ;;  %v1655_v2 = vcombine.low %v252_v57, %v256_v58  ;;  %v260_v6 = vld [vmem:[%s2325_s26 + $0xc0] sm:$0xff]  ;;  %v2124_v47 = vld [vmem:[%s2599_s1 + $0x138] sm:$0xff]  }
  0x1d   : > { %1856 = vmatpush3.bf16.msra.mxu1 %v2082_v19  ;;  %1799 = vmatprep.subr.bf16.mxu0 %v2083_v20  ;;  %v253_v59 = vld [vmem:[%s2325_s26 + $0x88] sm:$0xff]  ;;  %v264_v7 = vld [vmem:[%s2325_s26 + $0xe0] sm:$0xff]  ;;  %v243_v57 = vld [vmem:[%s2325_s26 + $0x38] sm:$0xff] }
  0x1e   : > { %1857 = vmatprep.subr.bf16.mxu1 %v2084_v21  ;;  %v257_v60 = vld [vmem:[%s2325_s26 + $0xa8] sm:$0xff]  ;;  %v1664_v9 = vcombine.high %v260_v6, %v264_v7  ;;  %v2111_v14 = vld [vmem:[%s2599_s1 + $0x160] sm:$0xff]   ;;  %v1663_v16 = vcombine.low %v260_v6, %v264_v7  ;;  %v254_v6 = vld [vmem:[%s2325_s26 + $0x90] sm:$0xff] }
  0x1f   : > { %v1658_v62 = vcombine.high %v253_v59, %v257_v60  ;;  %v1657_v4 = vcombine.low %v253_v59, %v257_v60  ;;  %v261_v8 = vld [vmem:[%s2325_s26 + $0xc8] sm:$0xff]  ;;  %v2112_v15 = vld [vmem:[%s2599_s1 + $0x120] sm:$0xff]   ;;  %v258_v7 = vld [vmem:[%s2325_s26 + $0xb0] sm:$0xff] }
  0x20   : > { %1800 = vmatpush3.bf16.msra.mxu0 %v2085_v22  ;;  %v265_v10 = vld [vmem:[%s2325_s26 + $0xe8] sm:$0xff]  ;;  %v2113_v17 = vld [vmem:[%s2599_s1 + $0x1e0] sm:$0xff]  }
  0x21   : > { %1858 = vmatpush3.bf16.msra.mxu1 %v2086_v23  ;;  %1801 = vmatprep.subr.bf16.mxu0 %v2087_v24  ;;  %v1666_v11 = vcombine.high %v261_v8, %v265_v10  ;;  %v268_v18 = vld [vmem:[%s2325_s26 + $0x100] sm:$0xff]  ;;  %v1665_v20 = vcombine.low %v261_v8, %v265_v10  ;;  %v269_v22 = vld [vmem:[%s2325_s26 + $0x108] sm:$0xff]  ;;  %v255_v8 = vld [vmem:[%s2325_s26 + $0x98] sm:$0xff] }
  0x22   : > { %1859 = vmatprep.subr.bf16.mxu1 %v2088_v25  ;;  %v272_v19 = vld [vmem:[%s2325_s26 + $0x120] sm:$0xff]  ;;  %v273_v23 = vld [vmem:[%s2325_s26 + $0x128] sm:$0xff] }
  0x23   : > { %v1672_v21 = vcombine.high %v268_v18, %v272_v19  ;;  %v1674_v24 = vcombine.high %v269_v22, %v273_v23  ;;  %v2114_v25 = vld [vmem:[%s2599_s1 + $0x1a0] sm:$0xff]   ;;  %v277_v32 = vld [vmem:[%s2325_s26 + $0x148] sm:$0xff]  ;;  %v1671_v34 = vcombine.low %v268_v18, %v272_v19  ;;  %v1673_v36 = vcombine.low %v269_v22, %v273_v23  ;;  %v270_v22 = vld [vmem:[%s2325_s26 + $0x110] sm:$0xff] }
  0x24   : > { %1802 = vmatpush3.bf16.msra.mxu0 %v2089_v26  ;;  %v2115_v26 = vld [vmem:[%s2599_s1 + $0x168] sm:$0xff]   ;;  %v1659_v18 = vcombine.low %v254_v6, %v258_v7  ;;  %v274_v23 = vld [vmem:[%s2325_s26 + $0x130] sm:$0xff] }
  0x25   : > { %1860 = vmatpush3.bf16.msra.mxu1 %v2090_v27  ;;  %1803 = vmatprep.subr.bf16.mxu0 %v2091_v28  ;;  %v2116_v27 = vld [vmem:[%s2599_s1 + $0x128] sm:$0xff]  }
  0x26   : > { %1861 = vmatprep.subr.bf16.mxu1 %v2092_v29  ;;  %v2117_v28 = vld [vmem:[%s2599_s1 + $0x1e8] sm:$0xff]  }
  0x27   : > { %v2118_v29 = vld [vmem:[%s2599_s1 + $0x1a8] sm:$0xff]  }
  0x28   : > { %1804 = vmatpush3.bf16.msra.mxu0 %v2093_v30  ;;  %v276_v30 = vld [vmem:[%s2325_s26 + $0x140] sm:$0xff]  ;;  %v281_v33 = vld [vmem:[%s2325_s26 + $0x168] sm:$0xff] }
  0x29   : > { %1862 = vmatpush3.bf16.msra.mxu1 %v2094_v31  ;;  %1905 = vmatprep.subr.bf16.mxu0 %v2095_v40  ;;  %v280_v31 = vld [vmem:[%s2325_s26 + $0x160] sm:$0xff]  ;;  %v1682_v39 = vcombine.high %v277_v32, %v281_v33  ;;  %v2121_v40 = vld [vmem:[%s2599_s1 + $0x1f0] sm:$0xff]   ;;  %v285_v44 = vld [vmem:[%s2325_s26 + $0x188] sm:$0xff] }
  0x2a   : > { %1963 = vmatprep.subr.bf16.mxu1 %v2097_v42  ;;  %v1680_v37 = vcombine.high %v276_v30, %v280_v31  ;;  %v284_v42 = vld [vmem:[%s2325_s26 + $0x180] sm:$0xff]  ;;  %v289_v45 = vld [vmem:[%s2325_s26 + $0x1a8] sm:$0xff]  ;;  %v1679_v48 = vcombine.low %v276_v30, %v280_v31  ;;  %v278_v30 = vld [vmem:[%s2325_s26 + $0x150] sm:$0xff] }
  0x2b   : > { %1131 = vmatmul.mubr.bf16.vlgmr.msra.gmra.mrb[0].mxu0 %v1639_v35  ;;  %v2119_v35 = vld [vmem:[%s2599_s1 + $0x170] sm:$0xff]   ;;  %v1689_v59 = vcombine.low %v285_v44, %v289_v45 }
  0x2c   : > { %1220 = vmatmul.mubr.bf16.vlgmr.msra.gmra.mrb[0].mxu1 %v1641_v38  ;;  %1906 = vmatpush3.bf16.msra.mxu0 %v2096_v41  ;;  %v2120_v38 = vld [vmem:[%s2599_s1 + $0x130] sm:$0xff]  }
  0x2d   : > { %1964 = vmatpush3.bf16.msra.mxu1 %v2098_v43  ;;  %1138 = vmatprep.mubr.bf16.mxu0 %v1648_v46  ;;  %v2122_v41 = vld [vmem:[%s2599_s1 + $0x1b0] sm:$0xff]   ;;  %v288_v43 = vld [vmem:[%s2325_s26 + $0x1a0] sm:$0xff]  ;;  %v2123_v46 = vld [vmem:[%s2599_s1 + $0x178] sm:$0xff]  }
  0x2e   : > { %1227 = vmatprep.mubr.bf16.mxu1 %v1650_v49  ;;  %1907 = vmatprep.subr.bf16.mxu0 %v2099_v50  ;;  %v2125_v49 = vld [vmem:[%s2599_s1 + $0x1f8] sm:$0xff]   ;;  %v1681_v50 = vcombine.low %v277_v32, %v281_v33  ;;  %v1687_v58 = vcombine.low %v284_v42, %v288_v43  ;;  %v282_v31 = vld [vmem:[%s2325_s26 + $0x170] sm:$0xff] }
  0x2f   : > { %1965 = vmatprep.subr.bf16.mxu1 %v2101_v54  ;;  %v238_v54 = vld [vmem:[%s2325_s26 + $0x10] sm:$0xff]  ;;  %v279_v32 = vld [vmem:[%s2325_s26 + $0x158] sm:$0xff] }
  0x30   : > { %1908 = vmatpush3.bf16.msra.mxu0 %v2100_v52  ;;  %v2126_v52 = vld [vmem:[%s2599_s1 + $0x1b8] sm:$0xff]  }
  0x31   : > { %1966 = vmatpush3.bf16.msra.mxu1 %v2102_v55  ;;  %1909 = vmatprep.subr.bf16.mxu0 %v2103_v56  ;;  %v242_v55 = vld [vmem:[%s2325_s26 + $0x30] sm:$0xff]  ;;  %v239_v56 = vld [vmem:[%s2325_s26 + $0x18] sm:$0xff] }
  0x32   : > { %1967 = vmatprep.subr.bf16.mxu1 %v2105_v0  ;;  %v1644_v60 = vcombine.high %v238_v54, %v242_v55  ;;  %v247_v0 = vld [vmem:[%s2325_s26 + $0x58] sm:$0xff] }
  0x33   : > { %1139 = vmatmul.mubr.bf16.gmra.mrb[4].mxu0 %v1647_v51  ;;  %v1688_v51 = vcombine.high %v284_v42, %v288_v43  ;;  %v283_v33 = vld [vmem:[%s2325_s26 + $0x178] sm:$0xff]  ;;  %v1683_v42 = vcombine.low %v278_v30, %v282_v31 }
  0x34   : > { %1228 = vmatmul.mubr.bf16.gmra.mrb[4].mxu1 %v1649_v53  ;;  %1146 = vmatprep.mubr.bf16.mxu0 %v1656_v61  ;;  %v1690_v53 = vcombine.high %v285_v44, %v289_v45  ;;  %v1646_v61 = vcombine.high %v239_v56, %v243_v57  ;;  %v1685_v43 = vcombine.low %v279_v32, %v283_v33 }
  0x35   : > { %1235 = vmatprep.mubr.bf16.mxu1 %v1658_v62  ;;  %1910 = vmatpush3.bf16.msra.mxu0 %v2104_v63  ;;  %v246_v62 = vld [vmem:[%s2325_s26 + $0x50] sm:$0xff] }
  0x36   : > { %1968 = vmatpush3.bf16.msra.mxu1 %v2106_v1  ;;  %1911 = vmatprep.subr.bf16.mxu0 %v2107_v3  ;;  %v250_v63 = vld [vmem:[%s2325_s26 + $0x70] sm:$0xff]  ;;  %v251_v1 = vld [vmem:[%s2325_s26 + $0x78] sm:$0xff]  ;;  %v1645_v3 = vcombine.low %v239_v56, %v243_v57  ;;  %v421_v57 = vld [vmem:[%s2490_s12 + $0x8] sm:$0xff] }
  0x37   : > { %1969 = vmatprep.subr.bf16.mxu1 %v2109_v12  ;;  %v1651_v10 = vcombine.low %v246_v62, %v250_v63  ;;  %v1660_v12 = vcombine.high %v254_v6, %v258_v7 }
  0x39   : > { %1912 = vmatpush3.bf16.msra.mxu0 %v2108_v5  ;;  %v1654_v5 = vcombine.high %v247_v0, %v251_v1 }
  0x3a   : > { %1970 = vmatpush3.bf16.msra.mxu1 %v2110_v13  ;;  %1913 = vmatprep.subr.bf16.mxu0 %v2111_v14  ;;  %v262_v14 = vld [vmem:[%s2325_s26 + $0xd0] sm:$0xff] }
  0x3b   : > { %1147 = vmatmul.mubr.bf16.gmra.mrb[8].mxu0 %v1655_v2  ;;  %1971 = vmatprep.subr.bf16.mxu1 %v2113_v17  ;;  %v1643_v2 = vcombine.low %v238_v54, %v242_v55  ;;  %v267_v17 = vld [vmem:[%s2325_s26 + $0xf8] sm:$0xff] }
  0x3c   : > { %1236 = vmatmul.mubr.bf16.gmra.mrb[8].mxu1 %v1657_v4  ;;  %1154 = vmatprep.mubr.bf16.mxu0 %v1664_v9  ;;  %v1652_v4 = vcombine.high %v246_v62, %v250_v63  ;;  %v259_v9 = vld [vmem:[%s2325_s26 + $0xb8] sm:$0xff] }
  0x3d   : > { %1243 = vmatprep.mubr.bf16.mxu1 %v1666_v11  ;;  %1914 = vmatpush3.bf16.msra.mxu0 %v2112_v15  ;;  %v1653_v11 = vcombine.low %v247_v0, %v251_v1  ;;  %v1662_v13 = vcombine.high %v255_v8, %v259_v9  ;;  %v266_v15 = vld [vmem:[%s2325_s26 + $0xf0] sm:$0xff]  ;;  %v1661_v19 = vcombine.low %v255_v8, %v259_v9 }
  0x3e   : > { %1972 = vmatpush3.bf16.msra.mxu1 %v2114_v25  ;;  %1915 = vmatprep.subr.bf16.mxu0 %v2115_v26  ;;  %v275_v25 = vld [vmem:[%s2325_s26 + $0x138] sm:$0xff]  ;;  %v1667_v26 = vcombine.low %v262_v14, %v266_v15 }
  0x3f   : > { %1973 = vmatprep.subr.bf16.mxu1 %v2117_v28  ;;  %v1676_v28 = vcombine.high %v270_v22, %v274_v23 }
  0x41   : > { %1916 = vmatpush3.bf16.msra.mxu0 %v2116_v27 }
  0x42   : > { %1974 = vmatpush3.bf16.msra.mxu1 %v2118_v29  ;;  %1917 = vmatprep.subr.bf16.mxu0 %v2119_v35 }
  0x43   : > { %1155 = vmatmul.mubr.bf16.gmra.mrb[12].mxu0 %v1663_v16  ;;  %1975 = vmatprep.subr.bf16.mxu1 %v2121_v40  ;;  %v263_v16 = vld [vmem:[%s2325_s26 + $0xd8] sm:$0xff] }
  0x44   : > { %1244 = vmatmul.mubr.bf16.gmra.mrb[12].mxu1 %v1665_v20  ;;  %1162 = vmatprep.mubr.bf16.mxu0 %v1672_v21  ;;  %v1668_v20 = vcombine.high %v262_v14, %v266_v15  ;;  %v1670_v21 = vcombine.high %v263_v16, %v267_v17  ;;  %v1669_v27 = vcombine.low %v263_v16, %v267_v17  ;;  %v287_v40 = vld [vmem:[%s2325_s26 + $0x198] sm:$0xff] }
  0x45   : > { %1251 = vmatprep.mubr.bf16.mxu1 %v1674_v24  ;;  %1918 = vmatpush3.bf16.msra.mxu0 %v2120_v38  ;;  %v271_v24 = vld [vmem:[%s2325_s26 + $0x118] sm:$0xff]  ;;  %v286_v38 = vld [vmem:[%s2325_s26 + $0x190] sm:$0xff] }
  0x46   : > { %1976 = vmatpush3.bf16.msra.mxu1 %v2122_v41  ;;  %1919 = vmatprep.subr.bf16.mxu0 %v2123_v46  ;;  %v1678_v29 = vcombine.high %v271_v24, %v275_v25  ;;  %v1677_v35 = vcombine.low %v271_v24, %v275_v25  ;;  %v291_v41 = vld [vmem:[%s2325_s26 + $0x1b8] sm:$0xff] }
  0x47   : > { %1977 = vmatprep.subr.bf16.mxu1 %v2125_v49  ;;  %v1694_v45 = vcombine.high %v287_v40, %v291_v41 }
  0x49   : > { %1920 = vmatpush3.bf16.msra.mxu0 %v2124_v47  ;;  %v1693_v47 = vcombine.low %v287_v40, %v291_v41  ;;  %v426_v40 = vld [vmem:[%s2490_s12 + $0x30] sm:$0xff] }
  0x4a   : > { %1978 = vmatpush3.bf16.msra.mxu1 %v2126_v52 }
  0x4b   : > { %1163 = vmatmul.mubr.bf16.gmra.mrb[16].mxu0 %v1671_v34  ;;  %v1675_v34 = vcombine.low %v270_v22, %v274_v23  ;;  %v424_v22 = vld [vmem:[%s2490_s12 + $0x20] sm:$0xff] }
  0x4c   : > { %1252 = vmatmul.mubr.bf16.gmra.mrb[16].mxu1 %v1673_v36  ;;  %1170 = vmatprep.mubr.bf16.mxu0 %v1680_v37  ;;  %v1684_v36 = vcombine.high %v278_v30, %v282_v31  ;;  %v1686_v37 = vcombine.high %v279_v32, %v283_v33 }
  0x4d   : > { %1259 = vmatprep.mubr.bf16.mxu1 %v1682_v39  ;;  %v290_v39 = vld [vmem:[%s2325_s26 + $0x1b0] sm:$0xff]  ;;  %s231_s26 = sadd.s32 %s2022_s23, %s2615_s10 }
  0x4e   : > { %v1692_v44 = vcombine.high %v286_v38, %v290_v39  ;;  %v1691_v46 = vcombine.low %v286_v38, %v290_v39  ;;  %s1638_s25 = sshll.u32 %s231_s26, 2 }
  0x4f   : > { %s2541_s28 = scalar_lea.vmem %s2601_s3, %s1638_s25 }
  0x53   : > { %1171 = vmatmul.mubr.bf16.gmra.mrb[20].mxu0 %v1679_v48 }
  0x54   : > { %1260 = vmatmul.mubr.bf16.gmra.mrb[20].mxu1 %v1681_v50  ;;  %1178 = vmatprep.mubr.bf16.mxu0 %v1688_v51  ;;  %v420_v50 = vld [vmem:[%s2490_s12] sm:$0xff] }
  0x55   : > { %1267 = vmatprep.mubr.bf16.mxu1 %v1690_v53 }
  0x5b   : > { %1179 = vmatmul.mubr.bf16.gmra.mrb[24].mxu0 %v1687_v58 }
  0x5c   : > { %1268 = vmatmul.mubr.bf16.gmra.mrb[24].mxu1 %v1689_v59  ;;  %1308 = vmatprep.mubr.bf16.mxu0 %v1644_v60 }
  0x5d   : > { %1397 = vmatprep.mubr.bf16.mxu1 %v1646_v61 }
  0x63   : > { %1309 = vmatmul.mubr.bf16.vlgmr.msra.gmra.mrb[28].mxu0 %v1643_v2 }
  0x64   : > { %1398 = vmatmul.mubr.bf16.vlgmr.msra.gmra.mrb[28].mxu1 %v1645_v3  ;;  %1316 = vmatprep.mubr.bf16.mxu0 %v1652_v4  ;;  %v422_v4 = vld [vmem:[%s2490_s12 + $0x10] sm:$0xff] }
  0x65   : > { %1405 = vmatprep.mubr.bf16.mxu1 %v1654_v5 }
  0x6b   : > { %1317 = vmatmul.mubr.bf16.gmra.mrb[32].mxu0 %v1651_v10 }
  0x6c   : > { %1406 = vmatmul.mubr.bf16.gmra.mrb[32].mxu1 %v1653_v11  ;;  %1324 = vmatprep.mubr.bf16.mxu0 %v1660_v12  ;;  %v423_v11 = vld [vmem:[%s2490_s12 + $0x18] sm:$0xff] }
  0x6d   : > { %1413 = vmatprep.mubr.bf16.mxu1 %v1662_v13 }
  0x73   : > { %1325 = vmatmul.mubr.bf16.gmra.mrb[36].mxu0 %v1659_v18 }
  0x74   : > { %1414 = vmatmul.mubr.bf16.gmra.mrb[36].mxu1 %v1661_v19  ;;  %1332 = vmatprep.mubr.bf16.mxu0 %v1668_v20 }
  0x75   : > { %1421 = vmatprep.mubr.bf16.mxu1 %v1670_v21 }
  0x7b   : > { %1333 = vmatmul.mubr.bf16.gmra.mrb[40].mxu0 %v1667_v26 }
  0x7c   : > { %1422 = vmatmul.mubr.bf16.gmra.mrb[40].mxu1 %v1669_v27  ;;  %1340 = vmatprep.mubr.bf16.mxu0 %v1676_v28 }
  0x7d   : > { %1429 = vmatprep.mubr.bf16.mxu1 %v1678_v29  ;;  %v425_v29 = vld [vmem:[%s2490_s12 + $0x28] sm:$0xff] }
  0x83   : > { %1341 = vmatmul.mubr.bf16.gmra.mrb[44].mxu0 %v1675_v34 }
  0x84   : > { %1430 = vmatmul.mubr.bf16.gmra.mrb[44].mxu1 %v1677_v35  ;;  %1348 = vmatprep.mubr.bf16.mxu0 %v1684_v36 }
  0x85   : > { %1437 = vmatprep.mubr.bf16.mxu1 %v1686_v37 }
  0x8b   : > { %1349 = vmatmul.mubr.bf16.gmra.mrb[48].mxu0 %v1683_v42 }
  0x8c   : > { %1438 = vmatmul.mubr.bf16.gmra.mrb[48].mxu1 %v1685_v43  ;;  %1356 = vmatprep.mubr.bf16.mxu0 %v1692_v44 }
  0x8d   : > { %1445 = vmatprep.mubr.bf16.mxu1 %v1694_v45 }
  0x93   : > { %1357 = vmatmul.mubr.bf16.gmra.mrb[52].mxu0 %v1691_v46 }
  0x94   : > { %1446 = vmatmul.mubr.bf16.gmra.mrb[52].mxu1 %v1693_v47  ;;  %v427_v47 = vld [vmem:[%s2490_s12 + $0x38] sm:$0xff] }
  0xfe   : > { %v1805_v48 = vpop.f32.mrb[0].mxu0 }
  0xff   : > { %v1863_v49 = vpop.f32.mrb[0].mxu1  ;;  %v1806_v51 = vpop.f32.mrb[1].mxu0 }
 0x100   : > { %v1807_v52 = vadd.f32 %v1806_v51, %v1805_v48  ;;  %v1864_v53 = vpop.f32.mrb[1].mxu1  ;;  %v1808_v54 = vpop.f32.mrb[2].mxu0 }
 0x101   : > { %v1865_v55 = vadd.f32 %v1864_v53, %v1863_v49  ;;  %v1866_v56 = vpop.f32.mrb[2].mxu1  ;;  %v1809_v58 = vpop.f32.mrb[3].mxu0 }
 0x102   : > { %v1133_v59 = vadd.f32 %v1807_v52, %v420_v50  ;;  %v1810_v60 = vadd.f32 %v1809_v58, %v1808_v54  ;;  %v1867_v61 = vpop.f32.mrb[3].mxu1  ;;  %v428_v58 = vld [vmem:[%s2490_s12 + $0x40] sm:$0xff] }
 0x103   : > { %v1868_v62 = vadd.f32 %v1867_v61, %v1866_v56 }
 0x104   : > { %v2494_v63 = vadd.f32 %v1865_v55, %v1133_v59  ;;  %v1136_v0 = vadd.f32 %v1810_v60, %v421_v57 }
 0x106   : > { %v2496_v1 = vadd.f32 %v1868_v62, %v1136_v0  ;;  %v1811_v2 = vpop.f32.mrb[4].mxu0 }
 0x107   : > { %v1869_v3 = vpop.f32.mrb[4].mxu1  ;;  %v1812_v5 = vpop.f32.mrb[5].mxu0 }
 0x108   : > { %v1813_v6 = vadd.f32 %v1812_v5, %v1811_v2  ;;  %v1870_v7 = vpop.f32.mrb[5].mxu1  ;;  %v1814_v8 = vpop.f32.mrb[6].mxu0 }
 0x109   : > { %v1871_v9 = vadd.f32 %v1870_v7, %v1869_v3  ;;  %v1872_v10 = vpop.f32.mrb[6].mxu1  ;;  %v1815_v12 = vpop.f32.mrb[7].mxu0  ;;  %v429_v3 = vld [vmem:[%s2490_s12 + $0x48] sm:$0xff] }
 0x10a   : > { %v1141_v13 = vadd.f32 %v1813_v6, %v422_v4  ;;  %v1816_v14 = vadd.f32 %v1815_v12, %v1814_v8  ;;  %v1873_v15 = vpop.f32.mrb[7].mxu1 }
 0x10b   : > { %v1874_v16 = vadd.f32 %v1873_v15, %v1872_v10 }
 0x10c   : > { %v2500_v17 = vadd.f32 %v1871_v9, %v1141_v13  ;;  %v1144_v18 = vadd.f32 %v1816_v14, %v423_v11  ;;  %v430_v14 = vld [vmem:[%s2490_s12 + $0x50] sm:$0xff] }
 0x10e   : > { %v2502_v19 = vadd.f32 %v1874_v16, %v1144_v18  ;;  %v1817_v20 = vpop.f32.mrb[8].mxu0 }
 0x10f   : > { %v1875_v21 = vpop.f32.mrb[8].mxu1  ;;  %v1818_v23 = vpop.f32.mrb[9].mxu0 }
 0x110   : > { %v1819_v24 = vadd.f32 %v1818_v23, %v1817_v20  ;;  %v1876_v25 = vpop.f32.mrb[9].mxu1  ;;  %v1820_v26 = vpop.f32.mrb[10].mxu0  ;;  %v431_v23 = vld [vmem:[%s2490_s12 + $0x58] sm:$0xff] }
 0x111   : > { %v1877_v27 = vadd.f32 %v1876_v25, %v1875_v21  ;;  %v1878_v28 = vpop.f32.mrb[10].mxu1  ;;  %v1821_v30 = vpop.f32.mrb[11].mxu0 }
 0x112   : > { %v1149_v31 = vadd.f32 %v1819_v24, %v424_v22  ;;  %v1822_v32 = vadd.f32 %v1821_v30, %v1820_v26  ;;  %v1879_v33 = vpop.f32.mrb[11].mxu1 }
 0x113   : > { %v1880_v34 = vadd.f32 %v1879_v33, %v1878_v28 }
 0x114   : > { %v2506_v35 = vadd.f32 %v1877_v27, %v1149_v31  ;;  %v1152_v36 = vadd.f32 %v1822_v32, %v425_v29 }
 0x116   : > { %v2508_v37 = vadd.f32 %v1880_v34, %v1152_v36  ;;  %v1823_v38 = vpop.f32.mrb[12].mxu0  ;;  %v432_v34 = vld [vmem:[%s2490_s12 + $0x60] sm:$0xff] }
 0x117   : > { %v1881_v39 = vpop.f32.mrb[12].mxu1  ;;  %v1824_v41 = vpop.f32.mrb[13].mxu0 }
 0x118   : > { %v1825_v42 = vadd.f32 %v1824_v41, %v1823_v38  ;;  %v1882_v43 = vpop.f32.mrb[13].mxu1  ;;  %v1826_v44 = vpop.f32.mrb[14].mxu0 }
 0x119   : > { %v1883_v45 = vadd.f32 %v1882_v43, %v1881_v39  ;;  %v1884_v46 = vpop.f32.mrb[14].mxu1  ;;  %v1827_v48 = vpop.f32.mrb[15].mxu0  ;;  %v433_v43 = vld [vmem:[%s2490_s12 + $0x68] sm:$0xff] }
 0x11a   : > { %v1157_v49 = vadd.f32 %v1825_v42, %v426_v40  ;;  %v1828_v50 = vadd.f32 %v1827_v48, %v1826_v44  ;;  %v1885_v51 = vpop.f32.mrb[15].mxu1 }
 0x11b   : > { %v1886_v52 = vadd.f32 %v1885_v51, %v1884_v46 }
 0x11c   : > { %v2512_v53 = vadd.f32 %v1883_v45, %v1157_v49  ;;  %v1160_v54 = vadd.f32 %v1828_v50, %v427_v47 }
 0x11e   : > { %v2514_v55 = vadd.f32 %v1886_v52, %v1160_v54  ;;  %v1829_v56 = vpop.f32.mrb[16].mxu0 }
 0x11f   : > { %v1887_v57 = vpop.f32.mrb[16].mxu1  ;;  %v1830_v59 = vpop.f32.mrb[17].mxu0 }
 0x120   : > { %v1831_v60 = vadd.f32 %v1830_v59, %v1829_v56  ;;  %v1888_v61 = vpop.f32.mrb[17].mxu1  ;;  %v1832_v62 = vpop.f32.mrb[18].mxu0 }
 0x121   : > { %v1889_v0 = vadd.f32 %v1888_v61, %v1887_v57  ;;  %v1890_v2 = vpop.f32.mrb[18].mxu1  ;;  %v1833_v4 = vpop.f32.mrb[19].mxu0 }
 0x122   : > { %v1165_v5 = vadd.f32 %v1831_v60, %v428_v58  ;;  %v1834_v6 = vadd.f32 %v1833_v4, %v1832_v62  ;;  %v1891_v7 = vpop.f32.mrb[19].mxu1 }
 0x123   : > { %v1892_v8 = vadd.f32 %v1891_v7, %v1890_v2 }
 0x124   : > { %v2518_v9 = vadd.f32 %v1889_v0, %v1165_v5  ;;  %v1168_v10 = vadd.f32 %v1834_v6, %v429_v3 }
 0x126   : > { %v2520_v11 = vadd.f32 %v1892_v8, %v1168_v10  ;;  %v1835_v12 = vpop.f32.mrb[20].mxu0 }
 0x127   : > { %v1893_v13 = vpop.f32.mrb[20].mxu1  ;;  %v1836_v15 = vpop.f32.mrb[21].mxu0 }
 0x128   : > { %v1837_v16 = vadd.f32 %v1836_v15, %v1835_v12  ;;  %v1894_v18 = vpop.f32.mrb[21].mxu1  ;;  %v1838_v20 = vpop.f32.mrb[22].mxu0 }
 0x129   : > { %v1895_v21 = vadd.f32 %v1894_v18, %v1893_v13  ;;  %v1896_v22 = vpop.f32.mrb[22].mxu1  ;;  %v1839_v24 = vpop.f32.mrb[23].mxu0 }
 0x12a   : > { %v1173_v25 = vadd.f32 %v1837_v16, %v430_v14  ;;  %v1840_v26 = vadd.f32 %v1839_v24, %v1838_v20  ;;  %v1897_v27 = vpop.f32.mrb[23].mxu1 }
 0x12b   : > { %v1898_v28 = vadd.f32 %v1897_v27, %v1896_v22 }
 0x12c   : > { %v2524_v29 = vadd.f32 %v1895_v21, %v1173_v25  ;;  %v1176_v30 = vadd.f32 %v1840_v26, %v431_v23 }
 0x12e   : > { %v2526_v31 = vadd.f32 %v1898_v28, %v1176_v30  ;;  %v1841_v32 = vpop.f32.mrb[24].mxu0 }
 0x12f   : > { %v1899_v33 = vpop.f32.mrb[24].mxu1  ;;  %v1842_v36 = vpop.f32.mrb[25].mxu0 }
 0x130   : > { %v1843_v38 = vadd.f32 %v1842_v36, %v1841_v32  ;;  %v1900_v39 = vpop.f32.mrb[25].mxu1  ;;  %v1844_v40 = vpop.f32.mrb[26].mxu0 }
 0x131   : > { %v1901_v41 = vadd.f32 %v1900_v39, %v1899_v33  ;;  %v1902_v42 = vpop.f32.mrb[26].mxu1  ;;  %v1845_v44 = vpop.f32.mrb[27].mxu0 }
 0x132   : > { %v1181_v45 = vadd.f32 %v1843_v38, %v432_v34  ;;  %v1846_v46 = vadd.f32 %v1845_v44, %v1844_v40  ;;  %v1903_v47 = vpop.f32.mrb[27].mxu1 }
 0x133   : > { %v1904_v48 = vadd.f32 %v1903_v47, %v1902_v42 }
 0x134   : > { %v2531_v49 = vadd.f32 %v1901_v41, %v1181_v45  ;;  %v1184_v50 = vadd.f32 %v1846_v46, %v433_v43 }
 0x136   : > { %v2533_v51 = vadd.f32 %v1904_v48, %v1184_v50  ;;  %v1921_v52 = vpop.f32.mrb[28].mxu0 }
 0x137   : > { %v1979_v54 = vpop.f32.mrb[28].mxu1  ;;  %v1922_v56 = vpop.f32.mrb[29].mxu0 }
 0x138   : > { %v1923_v57 = vadd.f32 %v1922_v56, %v1921_v52  ;;  %v1980_v58 = vpop.f32.mrb[29].mxu1  ;;  %v1924_v59 = vpop.f32.mrb[30].mxu0 }
 0x139   : > { %v1981_v60 = vadd.f32 %v1980_v58, %v1979_v54  ;;  %v1982_v61 = vpop.f32.mrb[30].mxu1  ;;  %v1925_v62 = vpop.f32.mrb[31].mxu0 }
 0x13a   : > { %v1311_v0 = vadd.f32 %v1923_v57, %v2494_v63  ;;  %v1926_v2 = vadd.f32 %v1925_v62, %v1924_v59  ;;  %v1983_v3 = vpop.f32.mrb[31].mxu1 }
 0x13b   : > { %v1984_v4 = vadd.f32 %v1983_v3, %v1982_v61 }
 0x13c   : > { %v1400_v5 = vadd.f32 %v1981_v60, %v1311_v0  ;;  %v1314_v6 = vadd.f32 %v1926_v2, %v2496_v1 }
 0x13e   : > { %v1775_v7 = vpack.c.bf16 %v1400_v5, %v1400_v5  ;;  %v1403_v8 = vadd.f32 %v1984_v4, %v1314_v6  ;;  %v1927_v10 = vpop.f32.mrb[32].mxu0 }
 0x13f   : > { %v1985_v12 = vpop.f32.mrb[32].mxu1  ;;  %v1928_v63 = vpop.f32.mrb[33].mxu0 }
 0x140   : > { %1511 = vst.msk [vmem:[%s2541_s28] sm:$0xf] %vm1510_vm0, %v1775_v7  ;;  %v1776_v13 = vpack.c.bf16 %v1403_v8, %v1403_v8  ;;  %v1929_v14 = vadd.f32 %v1928_v63, %v1927_v10  ;;  %v1986_v15 = vpop.f32.mrb[33].mxu1  ;;  %v1930_v16 = vpop.f32.mrb[34].mxu0 }
 0x141   : > { %v1987_v1 = vadd.f32 %v1986_v15, %v1985_v12  ;;  %v1988_v18 = vpop.f32.mrb[34].mxu1  ;;  %v1931_v20 = vpop.f32.mrb[35].mxu0 }
 0x142   : > { %1512 = vst.msk [vmem:[%s2541_s28 + $0x4] sm:$0xf] %vm1510_vm0, %v1776_v13  ;;  %v1319_v21 = vadd.f32 %v1929_v14, %v2500_v17  ;;  %v1932_v22 = vadd.f32 %v1931_v20, %v1930_v16  ;;  %v1989_v23 = vpop.f32.mrb[35].mxu1 }
 0x143   : > { %v1990_v24 = vadd.f32 %v1989_v23, %v1988_v18 }
 0x144   : > { %v1408_v25 = vadd.f32 %v1987_v1, %v1319_v21  ;;  %v1322_v26 = vadd.f32 %v1932_v22, %v2502_v19 }
 0x146   : > { %v1777_v27 = vpack.c.bf16 %v1408_v25, %v1408_v25  ;;  %v1411_v28 = vadd.f32 %v1990_v24, %v1322_v26  ;;  %v1933_v30 = vpop.f32.mrb[36].mxu0 }
 0x147   : > { %v1991_v32 = vpop.f32.mrb[36].mxu1  ;;  %v1934_v33 = vpop.f32.mrb[37].mxu0 }
 0x148   : > { %1513 = vst.msk [vmem:[%s2541_s28 + $0x8] sm:$0xf] %vm1510_vm0, %v1777_v27  ;;  %v1778_v34 = vpack.c.bf16 %v1411_v28, %v1411_v28  ;;  %v1935_v36 = vadd.f32 %v1934_v33, %v1933_v30  ;;  %v1992_v38 = vpop.f32.mrb[37].mxu1  ;;  %v1936_v39 = vpop.f32.mrb[38].mxu0 }
 0x149   : > { %v1993_v17 = vadd.f32 %v1992_v38, %v1991_v32  ;;  %v1994_v40 = vpop.f32.mrb[38].mxu1  ;;  %v1937_v41 = vpop.f32.mrb[39].mxu0 }
 0x14a   : > { %1514 = vst.msk [vmem:[%s2541_s28 + $0xc] sm:$0xf] %vm1510_vm0, %v1778_v34  ;;  %v1327_v42 = vadd.f32 %v1935_v36, %v2506_v35  ;;  %v1938_v19 = vadd.f32 %v1937_v41, %v1936_v39  ;;  %v1995_v43 = vpop.f32.mrb[39].mxu1 }
 0x14b   : > { %v1996_v44 = vadd.f32 %v1995_v43, %v1994_v40 }
 0x14c   : > { %v1416_v45 = vadd.f32 %v1993_v17, %v1327_v42  ;;  %v1330_v46 = vadd.f32 %v1938_v19, %v2508_v37 }
 0x14e   : > { %v1779_v47 = vpack.c.bf16 %v1416_v45, %v1416_v45  ;;  %v1419_v48 = vadd.f32 %v1996_v44, %v1330_v46  ;;  %v1939_v50 = vpop.f32.mrb[40].mxu0 }
 0x14f   : > { %v1997_v52 = vpop.f32.mrb[40].mxu1  ;;  %v1940_v54 = vpop.f32.mrb[41].mxu0 }
 0x150   : > { %1515 = vst.msk [vmem:[%s2541_s28 + $0x10] sm:$0xf] %vm1510_vm0, %v1779_v47  ;;  %v1780_v56 = vpack.c.bf16 %v1419_v48, %v1419_v48  ;;  %v1941_v57 = vadd.f32 %v1940_v54, %v1939_v50  ;;  %v1998_v58 = vpop.f32.mrb[41].mxu1  ;;  %v1942_v59 = vpop.f32.mrb[42].mxu0 }
 0x151   : > { %v1999_v35 = vadd.f32 %v1998_v58, %v1997_v52  ;;  %v2000_v60 = vpop.f32.mrb[42].mxu1  ;;  %v1943_v61 = vpop.f32.mrb[43].mxu0 }
 0x152   : > { %1516 = vst.msk [vmem:[%s2541_s28 + $0x14] sm:$0xf] %vm1510_vm0, %v1780_v56  ;;  %v1335_v62 = vadd.f32 %v1941_v57, %v2512_v53  ;;  %v1944_v37 = vadd.f32 %v1943_v61, %v1942_v59  ;;  %v2001_v0 = vpop.f32.mrb[43].mxu1 }
 0x153   : > { %v2002_v2 = vadd.f32 %v2001_v0, %v2000_v60 }
 0x154   : > { %v1424_v3 = vadd.f32 %v1999_v35, %v1335_v62  ;;  %v1338_v4 = vadd.f32 %v1944_v37, %v2514_v55 }
 0x156   : > { %v1781_v5 = vpack.c.bf16 %v1424_v3, %v1424_v3  ;;  %v1427_v6 = vadd.f32 %v2002_v2, %v1338_v4  ;;  %v1945_v7 = vpop.f32.mrb[44].mxu0 }
 0x157   : > { %v2003_v8 = vpop.f32.mrb[44].mxu1  ;;  %v1946_v10 = vpop.f32.mrb[45].mxu0 }
 0x158   : > { %1517 = vst.msk [vmem:[%s2541_s28 + $0x18] sm:$0xf] %vm1510_vm0, %v1781_v5  ;;  %v1782_v12 = vpack.c.bf16 %v1427_v6, %v1427_v6  ;;  %v1947_v63 = vadd.f32 %v1946_v10, %v1945_v7  ;;  %v2004_v13 = vpop.f32.mrb[45].mxu1  ;;  %v1948_v14 = vpop.f32.mrb[46].mxu0 }
 0x159   : > { %v2005_v53 = vadd.f32 %v2004_v13, %v2003_v8  ;;  %v2006_v15 = vpop.f32.mrb[46].mxu1  ;;  %v1949_v16 = vpop.f32.mrb[47].mxu0 }
 0x15a   : > { %1518 = vst.msk [vmem:[%s2541_s28 + $0x1c] sm:$0xf] %vm1510_vm0, %v1782_v12  ;;  %v1343_v1 = vadd.f32 %v1947_v63, %v2518_v9  ;;  %v1950_v55 = vadd.f32 %v1949_v16, %v1948_v14  ;;  %v2007_v18 = vpop.f32.mrb[47].mxu1 }
 0x15b   : > { %v2008_v20 = vadd.f32 %v2007_v18, %v2006_v15 }
 0x15c   : > { %v1432_v21 = vadd.f32 %v2005_v53, %v1343_v1  ;;  %v1346_v22 = vadd.f32 %v1950_v55, %v2520_v11 }
 0x15e   : > { %v1783_v23 = vpack.c.bf16 %v1432_v21, %v1432_v21  ;;  %v1435_v24 = vadd.f32 %v2008_v20, %v1346_v22  ;;  %v1951_v25 = vpop.f32.mrb[48].mxu0 }
 0x15f   : > { %v2009_v26 = vpop.f32.mrb[48].mxu1  ;;  %v1952_v27 = vpop.f32.mrb[49].mxu0 }
 0x160   : > { %1519 = vst.msk [vmem:[%s2541_s28 + $0x20] sm:$0xf] %vm1510_vm0, %v1783_v23  ;;  %v1784_v28 = vpack.c.bf16 %v1435_v24, %v1435_v24  ;;  %v1953_v30 = vadd.f32 %v1952_v27, %v1951_v25  ;;  %v2010_v32 = vpop.f32.mrb[49].mxu1  ;;  %v1954_v33 = vpop.f32.mrb[50].mxu0 }
 0x161   : > { %v2011_v9 = vadd.f32 %v2010_v32, %v2009_v26  ;;  %v2012_v34 = vpop.f32.mrb[50].mxu1  ;;  %v1955_v36 = vpop.f32.mrb[51].mxu0 }
 0x162   : > { %1520 = vst.msk [vmem:[%s2541_s28 + $0x24] sm:$0xf] %vm1510_vm0, %v1784_v28  ;;  %v1351_v38 = vadd.f32 %v1953_v30, %v2524_v29  ;;  %v1956_v11 = vadd.f32 %v1955_v36, %v1954_v33  ;;  %v2013_v39 = vpop.f32.mrb[51].mxu1 }
 0x163   : > { %v2014_v17 = vadd.f32 %v2013_v39, %v2012_v34 }
 0x164   : > { %v1440_v40 = vadd.f32 %v2011_v9, %v1351_v38  ;;  %v1354_v41 = vadd.f32 %v1956_v11, %v2526_v31 }
 0x166   : > { %v1785_v42 = vpack.c.bf16 %v1440_v40, %v1440_v40  ;;  %v1443_v19 = vadd.f32 %v2014_v17, %v1354_v41  ;;  %v1957_v43 = vpop.f32.mrb[52].mxu0 }
 0x167   : > { %v2015_v44 = vpop.f32.mrb[52].mxu1  ;;  %v1958_v45 = vpop.f32.mrb[53].mxu0 }
 0x168   : > { %1521 = vst.msk [vmem:[%s2541_s28 + $0x28] sm:$0xf] %vm1510_vm0, %v1785_v42  ;;  %v1786_v46 = vpack.c.bf16 %v1443_v19, %v1443_v19  ;;  %v1959_v47 = vadd.f32 %v1958_v45, %v1957_v43  ;;  %v2016_v48 = vpop.f32.mrb[53].mxu1  ;;  %v1960_v29 = vpop.f32.mrb[54].mxu0 }
 0x169   : > { %v2017_v50 = vadd.f32 %v2016_v48, %v2015_v44  ;;  %v2018_v52 = vpop.f32.mrb[54].mxu1  ;;  %v1961_v54 = vpop.f32.mrb[55].mxu0 }
 0x16a   : > { %1522 = vst.msk [vmem:[%s2541_s28 + $0x2c] sm:$0xf] %vm1510_vm0, %v1786_v46  ;;  %v1359_v31 = vadd.f32 %v1959_v47, %v2531_v49  ;;  %v1962_v56 = vadd.f32 %v1961_v54, %v1960_v29  ;;  %v2019_v57 = vpop.f32.mrb[55].mxu1 }
 0x16b   : > { %v2020_v58 = vadd.f32 %v2019_v57, %v2018_v52 }
 0x16c   : > { %v1448_v59 = vadd.f32 %v2017_v50, %v1359_v31  ;;  %v1362_v35 = vadd.f32 %v1962_v56, %v2533_v51 }
 0x16e   : > { %v1787_v60 = vpack.c.bf16 %v1448_v59, %v1448_v59  ;;  %v1451_v61 = vadd.f32 %v2020_v58, %v1362_v35 }
 0x170   : > { %1523 = vst.msk [vmem:[%s2541_s28 + $0x30] sm:$0xf] %vm1510_vm0, %v1787_v60  ;;  %v1788_v62 = vpack.c.bf16 %v1451_v61, %v1451_v61 }
 0x172   : > { %1524 = vst.msk [vmem:[%s2541_s28 + $0x34] sm:$0xf] %vm1510_vm0, %v1788_v62 }
 0x173 PF: > { %s13_s16 = sadd.s32 1, %s2165_s16   ;;  %s2602_s12 = smov %s2157_s14 }
 0x174   : > { %p10_p7 = scmp.ge.s32.totalorder %s13_s16, 6   ;;  %s2603_s13 = smov %s2161_s15 }
 0x175   : > { %s2604_s14 = smov %s2607_s17  ;;  %s2605_s15 = smov %s2611_s18 }
 0x176   :  { %12 = sbr.rel (!%p10_p7) target bundleno = 3 (0x3), region = 65 }

</bundles_post_ra>
